<compile_context>
chip_gen: v5e
topology: v5e:2x2
jax: 0.10.0
libtpu: 0.0.40
codegen_flags: <defaults>
</compile_context>

<pallas_src>
import math

import jax
import jax.numpy as jnp
from jax.experimental import pallas as pl
from jax.experimental.pallas import tpu as pltpu

_LANE = 128      # lane width: hidden dims padded to multiples of this
_SUBLANE = 8     # f32 sublane count: batch tiles are multiples of this
_MAX_TILE_B = 2048


def _round_up(n, m):
    return ((n + m - 1) // m) * m


# ----------------------------------------------------------------------------- kernel
def _c51_mlp_kernel(x_ref, w1_ref, b1_ref, w2_ref, b2_ref, w3_ref, b3_ref, o_ref):
    """Fused 3-layer MLP on one batch tile: relu(relu(x@W1+b1)@W2+b2)@W3+b3."""
    x = x_ref[...]
    if x.dtype != w1_ref.dtype:          # static (trace-time) cast for bf16 weights
        x = x.astype(w1_ref.dtype)
    # Layer 1: skinny-K matmul (K = obs, unpadded); f32 accumulate, f32 bias/ReLU.
    h1 = jnp.dot(x, w1_ref[...], preferred_element_type=jnp.float32) + b1_ref[...]
    h1 = jnp.maximum(h1, 0.0).astype(w2_ref.dtype)
    h2 = jnp.dot(h1, w2_ref[...], preferred_element_type=jnp.float32) + b2_ref[...]
    h2 = jnp.maximum(h2, 0.0).astype(w3_ref.dtype)
    out = jnp.dot(h2, w3_ref[...], preferred_element_type=jnp.float32) + b3_ref[...]
    o_ref[...] = out.astype(o_ref.dtype)


# ----------------------------------------------------------------------------- params
def init_c51_params(key, obs_size, act_size, natoms):
    """Deterministic parameter init (PyTorch Linear-style uniform bounds).

    Weights are stored as (in, out), i.e. the transpose of torch's Linear weight.
    """
    hid2 = int(act_size * natoms * 2)
    hid1 = int(hid2 * 1.5)
    out_dim = act_size * natoms

    dims = [(obs_size, hid1), (hid1, hid2), (hid2, out_dim)]
    params = []
    for i, (fan_in, fan_out) in enumerate(dims):
        kw, kb = jax.random.split(jax.random.fold_in(key, i))
        bound = 1.0 / math.sqrt(fan_in)
        w = jax.random.uniform(kw, (fan_in, fan_out), jnp.float32, -bound, bound)
        b = jax.random.uniform(kb, (1, fan_out), jnp.float32, -bound, bound)
        params += [w, b]
    return tuple(params)


def prepare_c51_params(params, *, param_dtype=jnp.float32):
    """One-time kernel layout of the params (call ONCE, reuse every forward).

    Hidden dims are zero-padded to 128 lanes; the obs dim (K of layer 1) and the
    final act*Natoms dim stay unpadded so x / out carry no padding bytes in HBM.
    Biases stay f32 (bias add / ReLU run in f32 inside the kernel).
    """
    w1, b1, w2, b2, w3, b3 = params
    obs = w1.shape[0]
    h1_p = _round_up(w1.shape[1], _LANE)
    h2_p = _round_up(w2.shape[1], _LANE)
    out_dim = w3.shape[1]

    def pad2(a, rows, cols, dtype):
        a = a.astype(dtype)
        return jnp.pad(a, ((0, rows - a.shape[0]), (0, cols - a.shape[1])))

    return (
        pad2(w1, obs, h1_p, param_dtype), pad2(b1, 1, h1_p, jnp.float32),
        pad2(w2, h1_p, h2_p, param_dtype), pad2(b2, 1, h2_p, jnp.float32),
        pad2(w3, h2_p, out_dim, param_dtype), pad2(b3, 1, out_dim, jnp.float32),
    )


# ----------------------------------------------------------------------------- tiling
def _choose_batch_tiling(batch, tile_b):
    """Return (tile_b, b_pad, n_tiles): sublane-aligned, padding-aware, and
    >=2 grid steps for large batches (v7x megacore needs >=2 'parallel' steps)."""
    b8 = _round_up(batch, _SUBLANE)
    if tile_b is not None:
        tile_b = _round_up(int(tile_b), _SUBLANE)   # enforce (8,128) block rule
        n = pl.cdiv(b8, tile_b)
        return tile_b, n * tile_b, n
    n = pl.cdiv(b8, _MAX_TILE_B)
    if n == 1 and b8 >= 256:
        n = 2                                        # give the 2nd TC work on v7x
    tile_b = _round_up(pl.cdiv(b8, n), _SUBLANE)
    return tile_b, n * tile_b, n


# ----------------------------------------------------------------------------- forward
def c51_forward(x, prepared_params, act_size, natoms, *, tile_b=None):
    """Pallas equivalent of C51Net.forward: returns (B, act_size, Natoms).

    `prepared_params` must come from prepare_c51_params (padded once, reused).
    Call this under jax.jit so the batch pad / slice / reshape fuse with the call.
    """
    w1p, b1p, w2p, b2p, w3p, b3p = prepared_params
    batch, obs = x.shape
    out_dim = act_size * natoms
    assert w1p.shape[0] == obs and w3p.shape[1] == out_dim

    tile_b, b_p, n_tiles = _choose_batch_tiling(batch, tile_b)
    xp = jnp.pad(x, ((0, b_p - batch), (0, 0))) if b_p != batch else x

    def resident(a):
        # Same (0, 0) block every grid step -> parameter stays VMEM-resident.
        return pl.BlockSpec(a.shape, lambda i: (0, 0))

    out_flat = pl.pallas_call(
        _c51_mlp_kernel,
        out_shape=jax.ShapeDtypeStruct((b_p, out_dim), jnp.float32),
        grid=(n_tiles,),
        in_specs=[
            # x tiled over batch; last dim == full array dim (obs), no lane padding.
            pl.BlockSpec((tile_b, obs), lambda i: (i, 0)),
            resident(w1p), resident(b1p),
            resident(w2p), resident(b2p),
            resident(w3p), resident(b3p),
        ],
        # Output at its real width (act*Natoms); full-dim last block -> masked vst,
        # but 4x less HBM write traffic than a 128-lane-padded slab.
        out_specs=pl.BlockSpec((tile_b, out_dim), lambda i: (i, 0)),
        compiler_params=pltpu.CompilerParams(
            dimension_semantics=("parallel",),        # megacore sharding on v7x
            vmem_limit_bytes=16 * 1024 * 1024,        # ~7 MiB actually needed
        ),
    )(xp, w1p, b1p, w2p, b2p, w3p, b3p)

    out_flat = out_flat[:batch] if b_p != batch else out_flat
    return out_flat.reshape(batch, act_size, natoms)


# ----------------------------------------------------------------------------- reference
def reference_forward(x, params, act_size, natoms):
    """Plain-JAX reference for correctness check (unpadded params)."""
    w1, b1, w2, b2, w3, b3 = params
    h1 = jnp.maximum(x @ w1 + b1, 0.0)
    h2 = jnp.maximum(h1 @ w2 + b2, 0.0)
    out = h2 @ w3 + b3
    return out.reshape(x.shape[0], act_size, natoms)


if __name__ == "__main__":
    # Small, forward-consistent shapes: obs_size=16, act_size=4, Natoms=8
    #   -> hid2 = 64, hid1 = 96, output = (B, 4, 8)
    obs_size, act_size, natoms = 16, 4, 8
    vmin, vmax = -10.0, 10.0

    key = jax.random.PRNGKey(0)
    k_x, k_x2, k_p = jax.random.split(key, 3)
    params = init_c51_params(k_p, obs_size, act_size, natoms)

    # One-time padded/kernel layout of the params (hoisted out of the call path).
    prepared = prepare_c51_params(params)  # param_dtype=jnp.bfloat16 on v6e/v7x if desired

    # Support buffer, as registered in the PyTorch module (not used by forward()).
    # TODO(synk): fuse the both()/qvals() epilogue (softmax over atoms + dot with
    # `support`) into the kernel so the RL loop can read q-values without a
    # second pass over the distribution.
    support = jnp.linspace(vmin, vmax, natoms)

    # Jit the whole wrapper so pad/slice/reshape fuse with the pallas_call
    # (important when the batch is tiny and fixed overheads dominate).
    fwd = jax.jit(lambda xx: c51_forward(xx, prepared, act_size, natoms))

    # Case 1: tiny batch (the canonical demo shape).
    x = jax.random.normal(k_x, (2, obs_size), dtype=jnp.float32)
    out = jax.block_until_ready(fwd(x))
    ref = reference_forward(x, params, act_size, natoms)
    assert out.shape == (2, act_size, natoms)
    assert jnp.allclose(out, ref, atol=1e-4, rtol=1e-4)

    # Case 2: non-multiple-of-8 batch to exercise batch padding / slicing.
    x2 = jax.random.normal(k_x2, (37, obs_size), dtype=jnp.float32)
    out2 = jax.block_until_ready(fwd(x2))
    ref2 = reference_forward(x2, params, act_size, natoms)
    assert out2.shape == (37, act_size, natoms)
    assert jnp.allclose(out2, ref2, atol=1e-4, rtol=1e-4)

    print("KERNEL_OK")
</pallas_src>

<mosaic_0001>
module attributes {stable_mosaic.version = 11 : i64} {
  func.func @_c51_mlp_kernel(%arg0: i32, %arg1: memref<8x16xf32, #tpu.memory_space<vmem>>, %arg2: memref<16x128xf32, #tpu.memory_space<vmem>>, %arg3: memref<1x128xf32, #tpu.memory_space<vmem>>, %arg4: memref<128x128xf32, #tpu.memory_space<vmem>>, %arg5: memref<1x128xf32, #tpu.memory_space<vmem>>, %arg6: memref<128x32xf32, #tpu.memory_space<vmem>>, %arg7: memref<1x32xf32, #tpu.memory_space<vmem>>, %arg8: memref<8x32xf32, #tpu.memory_space<vmem>>) attributes {dimension_semantics = [#tpu.dimension_semantics<parallel>], iteration_bounds = array<i64: 1>, scalar_prefetch = 0 : i64, scratch_operands = 0 : i64, tpu.core_type = #tpu.core_type<tc>, window_params = [{transform_indices = @transform_0, window_bounds = array<i64: 8, 16>}, {pipeline_mode = #tpu.pipeline_mode<synchronous>, transform_indices = @transform_1, window_bounds = array<i64: 16, 128>}, {pipeline_mode = #tpu.pipeline_mode<synchronous>, transform_indices = @transform_2, window_bounds = array<i64: 1, 128>}, {pipeline_mode = #tpu.pipeline_mode<synchronous>, transform_indices = @transform_3, window_bounds = array<i64: 128, 128>}, {pipeline_mode = #tpu.pipeline_mode<synchronous>, transform_indices = @transform_4, window_bounds = array<i64: 1, 128>}, {pipeline_mode = #tpu.pipeline_mode<synchronous>, transform_indices = @transform_5, window_bounds = array<i64: 128, 32>}, {pipeline_mode = #tpu.pipeline_mode<synchronous>, transform_indices = @transform_6, window_bounds = array<i64: 1, 32>}, {transform_indices = @transform_7, window_bounds = array<i64: 8, 32>}]} {
    %c0 = arith.constant 0 : index
    %c0_0 = arith.constant 0 : index
    %0 = vector.load %arg1[%c0, %c0_0] : memref<8x16xf32, #tpu.memory_space<vmem>>, vector<8x16xf32>
    %c0_1 = arith.constant 0 : index
    %c0_2 = arith.constant 0 : index
    %1 = vector.load %arg2[%c0_1, %c0_2] : memref<16x128xf32, #tpu.memory_space<vmem>>, vector<16x128xf32>
    %cst = arith.constant dense<0.000000e+00> : vector<8x128xf32>
    %2 = tpu.matmul %0, %1, %cst {dimension_numbers = #tpu.dot_dimension_numbers<[1], [0], [0], [1], [0, 0, 1, 1], [], []>} : vector<8x16xf32>, vector<16x128xf32>, vector<8x128xf32> -> vector<8x128xf32>
    %c0_3 = arith.constant 0 : index
    %c0_4 = arith.constant 0 : index
    %3 = vector.load %arg3[%c0_3, %c0_4] : memref<1x128xf32, #tpu.memory_space<vmem>>, vector<1x128xf32>
    %4 = vector.broadcast %3 : vector<1x128xf32> to vector<8x128xf32>
    %5 = arith.addf %2, %4 : vector<8x128xf32>
    %cst_5 = arith.constant 0.000000e+00 : f32
    %6 = vector.broadcast %cst_5 : f32 to vector<8x128xf32>
    %7 = arith.maximumf %5, %6 : vector<8x128xf32>
    %c0_6 = arith.constant 0 : index
    %c0_7 = arith.constant 0 : index
    %8 = vector.load %arg4[%c0_6, %c0_7] : memref<128x128xf32, #tpu.memory_space<vmem>>, vector<128x128xf32>
    %cst_8 = arith.constant dense<0.000000e+00> : vector<8x128xf32>
    %9 = tpu.matmul %7, %8, %cst_8 {dimension_numbers = #tpu.dot_dimension_numbers<[1], [0], [0], [1], [0, 0, 1, 1], [], []>} : vector<8x128xf32>, vector<128x128xf32>, vector<8x128xf32> -> vector<8x128xf32>
    %c0_9 = arith.constant 0 : index
    %c0_10 = arith.constant 0 : index
    %10 = vector.load %arg5[%c0_9, %c0_10] : memref<1x128xf32, #tpu.memory_space<vmem>>, vector<1x128xf32>
    %11 = vector.broadcast %10 : vector<1x128xf32> to vector<8x128xf32>
    %12 = arith.addf %9, %11 : vector<8x128xf32>
    %cst_11 = arith.constant 0.000000e+00 : f32
    %13 = vector.broadcast %cst_11 : f32 to vector<8x128xf32>
    %14 = arith.maximumf %12, %13 : vector<8x128xf32>
    %c0_12 = arith.constant 0 : index
    %c0_13 = arith.constant 0 : index
    %15 = vector.load %arg6[%c0_12, %c0_13] : memref<128x32xf32, #tpu.memory_space<vmem>>, vector<128x32xf32>
    %cst_14 = arith.constant dense<0.000000e+00> : vector<8x32xf32>
    %16 = tpu.matmul %14, %15, %cst_14 {dimension_numbers = #tpu.dot_dimension_numbers<[1], [0], [0], [1], [0, 0, 1, 1], [], []>} : vector<8x128xf32>, vector<128x32xf32>, vector<8x32xf32> -> vector<8x32xf32>
    %c0_15 = arith.constant 0 : index
    %c0_16 = arith.constant 0 : index
    %17 = vector.load %arg7[%c0_15, %c0_16] : memref<1x32xf32, #tpu.memory_space<vmem>>, vector<1x32xf32>
    %18 = vector.broadcast %17 : vector<1x32xf32> to vector<8x32xf32>
    %19 = arith.addf %16, %18 : vector<8x32xf32>
    %c0_17 = arith.constant 0 : index
    %c0_18 = arith.constant 0 : index
    %20 = vector.load %arg8[%c0_17, %c0_18] : memref<8x32xf32, #tpu.memory_space<vmem>>, vector<8x32xf32>
    tpu.vector_store %arg8[%c0_17, %c0_18], %19 {strides = array<i32>} : memref<8x32xf32, #tpu.memory_space<vmem>>, vector<8x32xf32>,
    return
  }
  func.func @transform_0(%arg0: i32) -> (i32, i32) {
    %c0_i32 = arith.constant 0 : i32
    %c0_i32_0 = arith.constant 0 : i32
    return %arg0, %c0_i32 : i32, i32
  }
  func.func @transform_1(%arg0: i32) -> (i32, i32) {
    %c0_i32 = arith.constant 0 : i32
    %c0_i32_0 = arith.constant 0 : i32
    %c0_i32_1 = arith.constant 0 : i32
    return %c0_i32, %c0_i32_0 : i32, i32
  }
  func.func @transform_2(%arg0: i32) -> (i32, i32) {
    %c0_i32 = arith.constant 0 : i32
    %c0_i32_0 = arith.constant 0 : i32
    %c0_i32_1 = arith.constant 0 : i32
    return %c0_i32, %c0_i32_0 : i32, i32
  }
  func.func @transform_3(%arg0: i32) -> (i32, i32) {
    %c0_i32 = arith.constant 0 : i32
    %c0_i32_0 = arith.constant 0 : i32
    %c0_i32_1 = arith.constant 0 : i32
    return %c0_i32, %c0_i32_0 : i32, i32
  }
  func.func @transform_4(%arg0: i32) -> (i32, i32) {
    %c0_i32 = arith.constant 0 : i32
    %c0_i32_0 = arith.constant 0 : i32
    %c0_i32_1 = arith.constant 0 : i32
    return %c0_i32, %c0_i32_0 : i32, i32
  }
  func.func @transform_5(%arg0: i32) -> (i32, i32) {
    %c0_i32 = arith.constant 0 : i32
    %c0_i32_0 = arith.constant 0 : i32
    %c0_i32_1 = arith.constant 0 : i32
    return %c0_i32, %c0_i32_0 : i32, i32
  }
  func.func @transform_6(%arg0: i32) -> (i32, i32) {
    %c0_i32 = arith.constant 0 : i32
    %c0_i32_0 = arith.constant 0 : i32
    %c0_i32_1 = arith.constant 0 : i32
    return %c0_i32, %c0_i32_0 : i32, i32
  }
  func.func @transform_7(%arg0: i32) -> (i32, i32) {
    %c0_i32 = arith.constant 0 : i32
    %c0_i32_0 = arith.constant 0 : i32
    return %arg0, %c0_i32 : i32, i32
  }
}

</mosaic_0001>

<bundles_post_ra>
// kernel: _lambda_.1
= control target key start
LH: loop header
LB: loop body
LE: loop exit
PB: predicated region body
PF: predicated region fallthrough
CT: control target
= control target key end

     0   :  { %12 = vsyncpa [#allocation3], 0  ;;  %s348_s0 = inlined_call_operand.vmem [shape: f32[8,16], index: 0, kind: input, shape index: {}]   ;;  %s349_s1 = inlined_call_operand.hbm [shape: f32[16,128], index: 1, kind: input, shape index: {}]   ;;  %s350_s2 = inlined_call_operand.vmem [shape: f32[1,128], index: 2, kind: input, shape index: {}]   ;;  %s351_s3 = inlined_call_operand.hbm [shape: f32[128,128], index: 3, kind: input, shape index: {}]   ;;  %s352_s4 = inlined_call_operand.vmem [shape: f32[1,128], index: 4, kind: input, shape index: {}]   ;;  %s353_s5 = inlined_call_operand.hbm [shape: f32[128,32], index: 5, kind: input, shape index: {}]   ;;  %s354_s6 = inlined_call_operand.vmem [shape: f32[1,32], index: 6, kind: input, shape index: {}]   ;;  %s355_s7 = inlined_call_operand.vmem [shape: f32[8,32], index: 7, kind: output, shape index: {}]  }
   0x1   :  { %13 = vsyncpa [#allocation5], 0  ;;  %s35_s26 = sshll.u32 %s351_s3, 4  ;;  %s279_s27 = smov [#allocation4]   ;;  %s36_s26 = int_to_ptr.hbm [resolvable:$true] %s35_s26 }
   0x2   :  { %s37_s28 = sshll.u32 %s279_s27, 4  ;;  %s20_s8 = sshll.u32 %s349_s1, 4  ;;  %s38_s28 = int_to_ptr.vmem [resolvable:$true] %s37_s28  ;;  %s21_s8 = int_to_ptr.hbm [resolvable:$true] %s20_s8 }
   0x3   :  { %s280_s9 = smov 128   ;;  %s281_s10 = smov 8  }
   0x4   :  { %43 = dma.hbm_to_vmem [thread:$0]  %s36_s26, 2048, %s38_s28, [#allocation5], %s280_s9, %s280_s9, %s281_s10  }
   0x5   :  { %s282_s11 = smov [#allocation2]   ;;  %s50_s15 = sshll.u32 %s353_s5, 4  ;;  %s51_s15 = int_to_ptr.hbm [resolvable:$true] %s50_s15 }
   0x6   :  { %s22_s12 = sshll.u32 %s282_s11, 4  ;;  %s283_s3 = smov [#allocation6]   ;;  %s23_s12 = int_to_ptr.vmem [resolvable:$true] %s22_s12 }
   0x7   :  { %28 = dma.hbm_to_vmem [thread:$0]  %s21_s8, 256, %s23_s12, [#allocation3], %s280_s9, %s280_s9, %s281_s10  }
   0x8   :  { %s52_s16 = sshll.u32 %s283_s3, 4  ;;  %s53_s16 = int_to_ptr.vmem [resolvable:$true] %s52_s16 }
   0x9   :  { %58 = dma.hbm_to_vmem [thread:$0]  %s51_s15, 2048, %s53_s16, [#allocation5], %s280_s9, %s280_s9, %s281_s10  }
   0xa   :  { %275 = dma.done.wait [#allocation3], 256  }
   0xb   :  { %276 = vsyncadd [#allocation3], 4294967040 }
   0xc   :  { %277 = dma.done.wait [#allocation5], 4096  }
   0xd   :  { %278 = vsyncadd [#allocation5], 4294963200  ;;  %v75_v0 = vld [vmem:[#allocation2 + $0x8] sm:$0xff]  ;;  %v74_v1 = vld [vmem:[#allocation2] sm:$0xff]  ;;  %vm80_vm0 = vcmask 130048   ;;  %vm186_vm1 = vcmask 261120  }
   0xe   :  { %98 = vmatpush.msra.mxu0 %v75_v0  ;;  %v73_v2 = vld [vmem:[%s348_s0] sm:$0xff]  ;;  %v120_v3 = vld [vmem:[#allocation4 + $0x78] sm:$0xff]  ;;  %v118_v5 = vld [vmem:[#allocation4 + $0x68] sm:$0xff] }
   0xf   :  { %v119_v4 = vld [vmem:[#allocation4 + $0x70] sm:$0xff]  ;;  %125 = vmatpush.msra.mxu1 %v120_v3  ;;  %v117_v6 = vld [vmem:[#allocation4 + $0x60] sm:$0xff]  ;;  %v116_v7 = vld [vmem:[#allocation4 + $0x58] sm:$0xff] }
  0x10   :  { %99 = vmatpush.msra.mxu0 %v74_v1  ;;  %v115_v8 = vld [vmem:[#allocation4 + $0x50] sm:$0xff]  ;;  %v114_v9 = vld [vmem:[#allocation4 + $0x48] sm:$0xff]  ;;  %v113_v10 = vld [vmem:[#allocation4 + $0x40] sm:$0xff] }
  0x11   :  { %194 = vmatmul.msk.f32.vlgmr.msra.gmra.mxu0 %vm80_vm0, %v73_v2  ;;  %126 = vmatpush.msra.mxu1 %v119_v4  ;;  %v112_v11 = vld [vmem:[#allocation4 + $0x38] sm:$0xff]  ;;  %v111_v12 = vld [vmem:[#allocation4 + $0x30] sm:$0xff]  ;;  %v110_v13 = vld [vmem:[#allocation4 + $0x28] sm:$0xff] }
  0x12   :  { %v109_v14 = vld [vmem:[#allocation4 + $0x20] sm:$0xff]  ;;  %v108_v15 = vld [vmem:[#allocation4 + $0x18] sm:$0xff]  ;;  %v107_v16 = vld [vmem:[#allocation4 + $0x10] sm:$0xff] }
  0x13   :  { %127 = vmatpush.msra.mxu1 %v118_v5  ;;  %v106_v17 = vld [vmem:[#allocation4 + $0x8] sm:$0xff]  ;;  %v105_v18 = vld [vmem:[#allocation4] sm:$0xff]  ;;  %v161_v19 = vld [vmem:[#allocation6 + $0x78] sm:$0xff] }
  0x14   :  { %v160_v20 = vld [vmem:[#allocation6 + $0x70] sm:$0xff]  ;;  %166 = vmatpush.msra.mxu2 %v161_v19  ;;  %v159_v21 = vld [vmem:[#allocation6 + $0x68] sm:$0xff]  ;;  %v158_v22 = vld [vmem:[#allocation6 + $0x60] sm:$0xff] }
  0x15   :  { %128 = vmatpush.msra.mxu1 %v117_v6  ;;  %v157_v23 = vld [vmem:[#allocation6 + $0x58] sm:$0xff]  ;;  %v156_v24 = vld [vmem:[#allocation6 + $0x50] sm:$0xff]  ;;  %v155_v25 = vld [vmem:[#allocation6 + $0x48] sm:$0xff] }
  0x16   :  { %167 = vmatpush.msra.mxu2 %v160_v20  ;;  %v154_v26 = vld [vmem:[#allocation6 + $0x40] sm:$0xff]  ;;  %v153_v27 = vld [vmem:[#allocation6 + $0x38] sm:$0xff]  ;;  %v152_v28 = vld [vmem:[#allocation6 + $0x30] sm:$0xff] }
  0x17   :  { %129 = vmatpush.msra.mxu1 %v116_v7  ;;  %v151_v29 = vld [vmem:[#allocation6 + $0x28] sm:$0xff]  ;;  %v150_v30 = vld [vmem:[#allocation6 + $0x20] sm:$0xff]  ;;  %v149_v31 = vld [vmem:[#allocation6 + $0x18] sm:$0xff] }
  0x18   :  { %168 = vmatpush.msra.mxu2 %v159_v21  ;;  %v200_v32 = vld [vmem:[%s350_s2] ss:$0 sm:$0xff]  ;;  %v147_v37 = vld [vmem:[#allocation6 + $0x8] sm:$0xff]  ;;  %v146_v38 = vld [vmem:[#allocation6] sm:$0xff] }
  0x19   :  { %130 = vmatpush.msra.mxu1 %v115_v8  ;;  %v148_v36 = vld [vmem:[#allocation6 + $0x10] sm:$0xff] }
  0x1a   :  { %169 = vmatpush.msra.mxu2 %v158_v22  ;;  %v201_v39 = vld [vmem:[%s352_s4] ss:$0 sm:$0xff] }
  0x1b   :  { %131 = vmatpush.msra.mxu1 %v114_v9  ;;  %v202_v43 = vld [vmem:[%s354_s6] ss:$0 sm:$0xff] }
  0x1c   :  { %170 = vmatpush.msra.mxu2 %v157_v23 }
  0x1d   :  { %132 = vmatpush.msra.mxu1 %v113_v10 }
  0x1e   :  { %171 = vmatpush.msra.mxu2 %v156_v24 }
  0x1f   :  { %133 = vmatpush.msra.mxu1 %v112_v11 }
  0x20   :  { %172 = vmatpush.msra.mxu2 %v155_v25 }
  0x21   :  { %134 = vmatpush.msra.mxu1 %v111_v12 }
  0x22   :  { %173 = vmatpush.msra.mxu2 %v154_v26 }
  0x23   :  { %135 = vmatpush.msra.mxu1 %v110_v13 }
  0x24   :  { %174 = vmatpush.msra.mxu2 %v153_v27 }
  0x25   :  { %136 = vmatpush.msra.mxu1 %v109_v14 }
  0x26   :  { %175 = vmatpush.msra.mxu2 %v152_v28 }
  0x27   :  { %137 = vmatpush.msra.mxu1 %v108_v15 }
  0x28   :  { %176 = vmatpush.msra.mxu2 %v151_v29 }
  0x29   :  { %138 = vmatpush.msra.mxu1 %v107_v16 }
  0x2a   :  { %177 = vmatpush.msra.mxu2 %v150_v30 }
  0x2b   :  { %139 = vmatpush.msra.mxu1 %v106_v17 }
  0x2c   :  { %178 = vmatpush.msra.mxu2 %v149_v31 }
  0x2d   :  { %140 = vmatpush.msra.mxu1 %v105_v18 }
  0x2e   :  { %179 = vmatpush.msra.mxu2 %v148_v36 }
  0x30   :  { %180 = vmatpush.msra.mxu2 %v147_v37 }
  0x32   :  { %181 = vmatpush.msra.mxu2 %v146_v38 }
  0x8e   :  { %v101_v33 = vpop.f32.mrf.mxu0 }
  0x8f   :  { %v102_v34 = vadd.f32 %v200_v32, %v101_v33 }
  0x91   :  { %v104_v35 = vmax.f32 %v102_v34, 0.0 }
  0x93   :  { %141 = vmatmul.f32.vlgmr.msra.gmra.mxu1 %v104_v35 }
 0x110   :  { %v142_v40 = vpop.f32.mrf.mxu1 }
 0x111   :  { %v143_v41 = vadd.f32 %v201_v39, %v142_v40 }
 0x113   :  { %v145_v42 = vmax.f32 %v143_v41, 0.0 }
 0x115   :  { %182 = vmatmul.f32.vlgmr.msra.gmra.mxu2 %v145_v42 }
 0x198   :  { %v183_v44 = vpop.f32.mrf.mxu2 }
 0x199   :  { %v184_v45 = vadd.f32 %v202_v43, %v183_v44 }
 0x19b   :  { %187 = vst.msk [vmem:[%s355_s7] sm:$0xff] %vm186_vm1, %v184_v45 }
 0x19c   :  { %192 = vsyncpa [#allocation3], 1 }
 0x19d   :  { %193 = vsyncpa [#allocation5], 1 }

</bundles_post_ra>
